<compile_context>
chip_gen: v5e
topology: v5e:2x2
jax: 0.10.0
libtpu: 0.0.40
codegen_flags: <defaults>
</compile_context>

<pallas_src>
import functools

import jax
import jax.numpy as jnp
from jax.experimental import pallas as pl
from jax.experimental.pallas import tpu as pltpu


def _flash_attn_kernel(q_ref, k_ref, v_ref, o_ref, m_sc, l_sc, acc_sc):
    """One (bh_tile, tq) query block against one (bh_tile, tk) key/value block."""
    kv = pl.program_id(2)

    @pl.when(kv == 0)
    def _init():
        m_sc[...] = jnp.full_like(m_sc, -jnp.inf)
        l_sc[...] = jnp.zeros_like(l_sc)
        acc_sc[...] = jnp.zeros_like(acc_sc)

    # scores: contract head_dim of Q and K directly (no transposed K copy);
    # operands stay in their native dtype, accumulation is f32 on the MXU.
    s = jnp.einsum(
        "bqd,bkd->bqk", q_ref[...], k_ref[...],
        preferred_element_type=jnp.float32,
    )
    # No 1/sqrt(D) scaling: matches the module's scale=False default.

    m_prev = m_sc[...]
    m_new = jnp.maximum(m_prev, jnp.max(s, axis=-1, keepdims=True))
    alpha = jnp.exp(m_prev - m_new)          # rescale factor for old accumulators
    p = jnp.exp(s - m_new)                   # f32 unnormalized probabilities
    l_sc[...] = alpha * l_sc[...] + jnp.sum(p, axis=-1, keepdims=True)
    acc_sc[...] = alpha * acc_sc[...] + jnp.einsum(
        "bqk,bkd->bqd", p.astype(v_ref.dtype), v_ref[...],
        preferred_element_type=jnp.float32,
    )
    m_sc[...] = m_new

    @pl.when(kv == pl.num_programs(2) - 1)
    def _finalize():
        inv_l = pl.reciprocal(l_sc[...], approx=True)   # EUP vrcp, nearly free
        o_ref[...] = (acc_sc[...] * inv_l).astype(o_ref.dtype)


def _pick_seq_tile(s, target):
    """Largest tile <= target that divides s and keeps sublane (x8) alignment."""
    if s <= target:
        return s
    for t in range(target, 0, -1):
        if s % t == 0 and t % 8 == 0:
            return t
    return s


def _largest_divisor_leq(n, cap):
    best = 1
    for d in range(1, min(n, cap) + 1):
        if n % d == 0:
            best = d
    return best


@functools.partial(jax.jit, static_argnames=("q_tile", "k_tile"))
def scaled_dot_product_attention(Q, K, V, *, q_tile=256, k_tile=256):
    """Pallas TPU flash-attention forward (eval mode) of the PyTorch module."""
    B, H, S, D = Q.shape
    assert K.shape == (B, H, S, D) and V.shape == (B, H, S, D)
    BH = B * H

    q3 = Q.reshape(BH, S, D)
    k3 = K.reshape(BH, S, D)
    v3 = V.reshape(BH, S, D)

    # Sequence tiles: 256-multiples feed the 256x256 MXU on v6e/v7x; v5e's
    # 128x128 MXU is already saturated by these sizes.  Small S => full-S tiles.
    tq = _pick_seq_tile(S, q_tile)
    tk = _pick_seq_tile(S, k_tile)

    # Fold several (batch, head) pairs into one grid step when the per-step
    # score tile is small, to amortize per-step grid overhead and present
    # larger, denser blocks (the dominant lever for tiny S / small D shapes).
    cap = max(1, (128 * 128) // (tq * tk))
    bh_tile = _largest_divisor_leq(BH, cap)

    nbh = BH // bh_tile
    nq = S // tq
    nk = S // tk

    q_idx = lambda bh, qi, ki: (bh, qi, 0)
    kv_idx = lambda bh, qi, ki: (bh, ki, 0)

    # Deeper pipelining on the streamed K/V blocks only when there is a real
    # reduction loop whose HBM latency must be hidden behind the MXU bursts.
    kv_kwargs = dict(pipeline_mode=pl.Buffered(3)) if nk >= 3 else {}

    out = pl.pallas_call(
        _flash_attn_kernel,
        out_shape=jax.ShapeDtypeStruct((BH, S, D), Q.dtype),
        grid_spec=pltpu.PrefetchScalarGridSpec(
            num_scalar_prefetch=0,
            grid=(nbh, nq, nk),
            in_specs=[
                pl.BlockSpec((bh_tile, tq, D), q_idx),
                pl.BlockSpec((bh_tile, tk, D), kv_idx, **kv_kwargs),
                pl.BlockSpec((bh_tile, tk, D), kv_idx, **kv_kwargs),
            ],
            out_specs=pl.BlockSpec((bh_tile, tq, D), q_idx),
            scratch_shapes=[
                pltpu.VMEM((bh_tile, tq, 1), jnp.float32),   # running max m
                pltpu.VMEM((bh_tile, tq, 1), jnp.float32),   # running sum l
                pltpu.VMEM((bh_tile, tq, D), jnp.float32),   # f32 output accumulator
            ],
        ),
        compiler_params=pltpu.CompilerParams(
            dimension_semantics=("parallel", "parallel", "arbitrary"),
        ),
    )(q3, k3, v3)

    return out.reshape(B, H, S, D)


def _reference(Q, K, V):
    scores = jnp.einsum(
        "bhqd,bhkd->bhqk", Q.astype(jnp.float32), K.astype(jnp.float32))
    attn = jax.nn.softmax(scores, axis=-1)
    return jnp.einsum("bhqk,bhkd->bhqd", attn, V.astype(jnp.float32)).astype(Q.dtype)


if __name__ == "__main__":
    key = jax.random.PRNGKey(0)
    kq, kk, kv = jax.random.split(key, 3)

    B, H, S, D = 2, 4, 8, 32
    Q = jax.random.normal(kq, (B, H, S, D), dtype=jnp.float32)
    K = jax.random.normal(kk, (B, H, S, D), dtype=jnp.float32)
    V = jax.random.normal(kv, (B, H, S, D), dtype=jnp.float32)

    out = scaled_dot_product_attention(Q, K, V)
    out = jax.block_until_ready(out)

    ref = _reference(Q, K, V)
    assert out.shape == (B, H, S, D)
    # tolerance accommodates the EUP approximate reciprocal in the finalize step
    assert jnp.allclose(out, ref, atol=1e-2, rtol=1e-2), "mismatch vs reference"

    print("KERNEL_OK")
</pallas_src>

<mosaic_0001>
module attributes {stable_mosaic.version = 11 : i64} {
  func.func @_flash_attn_kernel(%arg0: i32, %arg1: i32, %arg2: i32, %arg3: memref<8x8x32xf32, #tpu.memory_space<vmem>>, %arg4: memref<8x8x32xf32, #tpu.memory_space<vmem>>, %arg5: memref<8x8x32xf32, #tpu.memory_space<vmem>>, %arg6: memref<8x8x32xf32, #tpu.memory_space<vmem>>, %arg7: memref<8x8x1xf32, #tpu.memory_space<vmem>>, %arg8: memref<8x8x1xf32, #tpu.memory_space<vmem>>, %arg9: memref<8x8x32xf32, #tpu.memory_space<vmem>>) attributes {dimension_semantics = [#tpu.dimension_semantics<parallel>, #tpu.dimension_semantics<parallel>, #tpu.dimension_semantics<arbitrary>], iteration_bounds = array<i64: 1, 1, 1>, scalar_prefetch = 0 : i64, scratch_operands = 3 : i64, tpu.core_type = #tpu.core_type<tc>, window_params = [{transform_indices = @transform_0, window_bounds = array<i64: 8, 8, 32>}, {transform_indices = @transform_1, window_bounds = array<i64: 8, 8, 32>}, {transform_indices = @transform_2, window_bounds = array<i64: 8, 8, 32>}, {transform_indices = @transform_3, window_bounds = array<i64: 8, 8, 32>}]} {
    %c0_i32 = arith.constant 0 : i32
    %0 = arith.cmpi eq, %arg2, %c0_i32 : i32
    %1 = arith.extui %0 : i1 to i32
    %c0_i32_0 = arith.constant 0 : i32
    %2 = arith.cmpi ne, %1, %c0_i32_0 : i32
    scf.if %2 {
      %cst_32 = arith.constant 0xFF800000 : f32
      %32 = vector.broadcast %cst_32 : f32 to vector<8x8x1xf32>
      %c0_33 = arith.constant 0 : index
      %c0_34 = arith.constant 0 : index
      %c0_35 = arith.constant 0 : index
      %33 = vector.load %arg7[%c0_33, %c0_34, %c0_35] : memref<8x8x1xf32, #tpu.memory_space<vmem>>, vector<8x8x1xf32>
      tpu.vector_store %arg7[%c0_33, %c0_34, %c0_35], %32 {strides = array<i32>} : memref<8x8x1xf32, #tpu.memory_space<vmem>>, vector<8x8x1xf32>,
      %cst_36 = arith.constant 0.000000e+00 : f32
      %34 = vector.broadcast %cst_36 : f32 to vector<8x8x1xf32>
      %c0_37 = arith.constant 0 : index
      %c0_38 = arith.constant 0 : index
      %c0_39 = arith.constant 0 : index
      %35 = vector.load %arg8[%c0_37, %c0_38, %c0_39] : memref<8x8x1xf32, #tpu.memory_space<vmem>>, vector<8x8x1xf32>
      tpu.vector_store %arg8[%c0_37, %c0_38, %c0_39], %34 {strides = array<i32>} : memref<8x8x1xf32, #tpu.memory_space<vmem>>, vector<8x8x1xf32>,
      %cst_40 = arith.constant 0.000000e+00 : f32
      %36 = vector.broadcast %cst_40 : f32 to vector<8x8x32xf32>
      %c0_41 = arith.constant 0 : index
      %c0_42 = arith.constant 0 : index
      %c0_43 = arith.constant 0 : index
      %37 = vector.load %arg9[%c0_41, %c0_42, %c0_43] : memref<8x8x32xf32, #tpu.memory_space<vmem>>, vector<8x8x32xf32>
      tpu.vector_store %arg9[%c0_41, %c0_42, %c0_43], %36 {strides = array<i32>} : memref<8x8x32xf32, #tpu.memory_space<vmem>>, vector<8x8x32xf32>,
    } else {
    }
    %c0 = arith.constant 0 : index
    %c0_1 = arith.constant 0 : index
    %c0_2 = arith.constant 0 : index
    %3 = vector.load %arg3[%c0, %c0_1, %c0_2] : memref<8x8x32xf32, #tpu.memory_space<vmem>>, vector<8x8x32xf32>
    %c0_3 = arith.constant 0 : index
    %c0_4 = arith.constant 0 : index
    %c0_5 = arith.constant 0 : index
    %4 = vector.load %arg4[%c0_3, %c0_4, %c0_5] : memref<8x8x32xf32, #tpu.memory_space<vmem>>, vector<8x8x32xf32>
    "tpu.trace_start"() <{level = 10 : i32, message = "bqd,bkd->bqk"}> : () -> ()
    %cst = arith.constant dense<0.000000e+00> : vector<8x8x8xf32>
    %5 = tpu.matmul %3, %4, %cst {dimension_numbers = #tpu.dot_dimension_numbers<[2], [2], [1], [1], [0, 0, 0, 1, 1, 1], [0], [0]>} : vector<8x8x32xf32>, vector<8x8x32xf32>, vector<8x8x8xf32> -> vector<8x8x8xf32>
    "tpu.trace_stop"() : () -> ()
    %c0_6 = arith.constant 0 : index
    %c0_7 = arith.constant 0 : index
    %c0_8 = arith.constant 0 : index
    %6 = vector.load %arg7[%c0_6, %c0_7, %c0_8] : memref<8x8x1xf32, #tpu.memory_space<vmem>>, vector<8x8x1xf32>
    %cst_9 = arith.constant dense<0xFF800000> : vector<8x8xf32>
    %7 = vector.multi_reduction <maximumf>, %5, %cst_9 [2] : vector<8x8x8xf32> to vector<8x8xf32>
    %8 = vector.shape_cast %7 : vector<8x8xf32> to vector<8x8x1xf32>
    %9 = arith.maximumf %6, %8 : vector<8x8x1xf32>
    %10 = arith.subf %6, %9 : vector<8x8x1xf32>
    %11 = math.exp %10 : vector<8x8x1xf32>
    %12 = vector.broadcast %9 : vector<8x8x1xf32> to vector<8x8x8xf32>
    %13 = arith.subf %5, %12 : vector<8x8x8xf32>
    %14 = math.exp %13 : vector<8x8x8xf32>
    %c0_10 = arith.constant 0 : index
    %c0_11 = arith.constant 0 : index
    %c0_12 = arith.constant 0 : index
    %15 = vector.load %arg8[%c0_10, %c0_11, %c0_12] : memref<8x8x1xf32, #tpu.memory_space<vmem>>, vector<8x8x1xf32>
    %16 = arith.mulf %11, %15 : vector<8x8x1xf32>
    %cst_13 = arith.constant dense<0.000000e+00> : vector<8x8xf32>
    %17 = vector.multi_reduction <add>, %14, %cst_13 [2] : vector<8x8x8xf32> to vector<8x8xf32>
    %18 = vector.shape_cast %17 : vector<8x8xf32> to vector<8x8x1xf32>
    %19 = arith.addf %16, %18 : vector<8x8x1xf32>
    %c0_14 = arith.constant 0 : index
    %c0_15 = arith.constant 0 : index
    %c0_16 = arith.constant 0 : index
    %20 = vector.load %arg8[%c0_14, %c0_15, %c0_16] : memref<8x8x1xf32, #tpu.memory_space<vmem>>, vector<8x8x1xf32>
    tpu.vector_store %arg8[%c0_14, %c0_15, %c0_16], %19 {strides = array<i32>} : memref<8x8x1xf32, #tpu.memory_space<vmem>>, vector<8x8x1xf32>,
    %c0_17 = arith.constant 0 : index
    %c0_18 = arith.constant 0 : index
    %c0_19 = arith.constant 0 : index
    %21 = vector.load %arg9[%c0_17, %c0_18, %c0_19] : memref<8x8x32xf32, #tpu.memory_space<vmem>>, vector<8x8x32xf32>
    %22 = vector.broadcast %11 : vector<8x8x1xf32> to vector<8x8x32xf32>
    %23 = arith.mulf %22, %21 : vector<8x8x32xf32>
    %c0_20 = arith.constant 0 : index
    %c0_21 = arith.constant 0 : index
    %c0_22 = arith.constant 0 : index
    %24 = vector.load %arg5[%c0_20, %c0_21, %c0_22] : memref<8x8x32xf32, #tpu.memory_space<vmem>>, vector<8x8x32xf32>
    "tpu.trace_start"() <{level = 10 : i32, message = "bqk,bkd->bqd"}> : () -> ()
    %cst_23 = arith.constant dense<0.000000e+00> : vector<8x8x32xf32>
    %25 = tpu.matmul %14, %24, %cst_23 {dimension_numbers = #tpu.dot_dimension_numbers<[2], [1], [1], [2], [0, 0, 0, 1, 1, 2], [0], [0]>} : vector<8x8x8xf32>, vector<8x8x32xf32>, vector<8x8x32xf32> -> vector<8x8x32xf32>
    "tpu.trace_stop"() : () -> ()
    %26 = arith.addf %23, %25 : vector<8x8x32xf32>
    %c0_24 = arith.constant 0 : index
    %c0_25 = arith.constant 0 : index
    %c0_26 = arith.constant 0 : index
    %27 = vector.load %arg9[%c0_24, %c0_25, %c0_26] : memref<8x8x32xf32, #tpu.memory_space<vmem>>, vector<8x8x32xf32>
    tpu.vector_store %arg9[%c0_24, %c0_25, %c0_26], %26 {strides = array<i32>} : memref<8x8x32xf32, #tpu.memory_space<vmem>>, vector<8x8x32xf32>,
    %c0_27 = arith.constant 0 : index
    %c0_28 = arith.constant 0 : index
    %c0_29 = arith.constant 0 : index
    %28 = vector.load %arg7[%c0_27, %c0_28, %c0_29] : memref<8x8x1xf32, #tpu.memory_space<vmem>>, vector<8x8x1xf32>
    tpu.vector_store %arg7[%c0_27, %c0_28, %c0_29], %9 {strides = array<i32>} : memref<8x8x1xf32, #tpu.memory_space<vmem>>, vector<8x8x1xf32>,
    %c0_i32_30 = arith.constant 0 : i32
    %29 = arith.cmpi eq, %arg2, %c0_i32_30 : i32
    %30 = arith.extui %29 : i1 to i32
    %c0_i32_31 = arith.constant 0 : i32
    %31 = arith.cmpi ne, %30, %c0_i32_31 : i32
    scf.if %31 {
      %c0_32 = arith.constant 0 : index
      %c0_33 = arith.constant 0 : index
      %c0_34 = arith.constant 0 : index
      %32 = vector.load %arg8[%c0_32, %c0_33, %c0_34] : memref<8x8x1xf32, #tpu.memory_space<vmem>>, vector<8x8x1xf32>
      %33 = tpu.reciprocal %32 {approx = true} : vector<8x8x1xf32> -> vector<8x8x1xf32>
      %c0_35 = arith.constant 0 : index
      %c0_36 = arith.constant 0 : index
      %c0_37 = arith.constant 0 : index
      %34 = vector.load %arg9[%c0_35, %c0_36, %c0_37] : memref<8x8x32xf32, #tpu.memory_space<vmem>>, vector<8x8x32xf32>
      %35 = vector.broadcast %33 : vector<8x8x1xf32> to vector<8x8x32xf32>
      %36 = arith.mulf %34, %35 : vector<8x8x32xf32>
      %c0_38 = arith.constant 0 : index
      %c0_39 = arith.constant 0 : index
      %c0_40 = arith.constant 0 : index
      %37 = vector.load %arg6[%c0_38, %c0_39, %c0_40] : memref<8x8x32xf32, #tpu.memory_space<vmem>>, vector<8x8x32xf32>
      tpu.vector_store %arg6[%c0_38, %c0_39, %c0_40], %36 {strides = array<i32>} : memref<8x8x32xf32, #tpu.memory_space<vmem>>, vector<8x8x32xf32>,
    } else {
    }
    return
  }
  func.func @transform_0(%arg0: i32, %arg1: i32, %arg2: i32) -> (i32, i32, i32) {
    %c0_i32 = arith.constant 0 : i32
    %c0_i32_0 = arith.constant 0 : i32
    return %arg0, %arg1, %c0_i32 : i32, i32, i32
  }
  func.func @transform_1(%arg0: i32, %arg1: i32, %arg2: i32) -> (i32, i32, i32) {
    %c0_i32 = arith.constant 0 : i32
    %c0_i32_0 = arith.constant 0 : i32
    return %arg0, %arg2, %c0_i32 : i32, i32, i32
  }
  func.func @transform_2(%arg0: i32, %arg1: i32, %arg2: i32) -> (i32, i32, i32) {
    %c0_i32 = arith.constant 0 : i32
    %c0_i32_0 = arith.constant 0 : i32
    return %arg0, %arg2, %c0_i32 : i32, i32, i32
  }
  func.func @transform_3(%arg0: i32, %arg1: i32, %arg2: i32) -> (i32, i32, i32) {
    %c0_i32 = arith.constant 0 : i32
    %c0_i32_0 = arith.constant 0 : i32
    return %arg0, %arg1, %c0_i32 : i32, i32, i32
  }
}

</mosaic_0001>

<bundles_post_ra>
// kernel: scaled_dot_product_attention.1
= control target key start
LH: loop header
LB: loop body
LE: loop exit
PB: predicated region body
PF: predicated region fallthrough
CT: control target
= control target key end

     0   :  { %8 = vsyncpa [#allocation6], 0  ;;  %s1295_s0 = inlined_call_operand.hbm [shape: f32[8,8,32], index: 0, kind: input, shape index: {}]   ;;  %s1296_s1 = inlined_call_operand.hbm [shape: f32[8,8,32], index: 1, kind: input, shape index: {}]   ;;  %s1297_s2 = inlined_call_operand.hbm [shape: f32[8,8,32], index: 2, kind: input, shape index: {}]   ;;  %s1298_s3 = inlined_call_operand.hbm [shape: f32[8,8,32], index: 3, kind: output, shape index: {}]  }
   0x1   :  { %9 = vsyncpa [#allocation9], 0 }
   0x2   :  { %10 = vsyncpa [#allocation7], 0  ;;  %s28_s14 = sshll.u32 %s1296_s1, 4  ;;  %s1064_s15 = smov [#allocation8]   ;;  %s29_s14 = int_to_ptr.hbm [resolvable:$true] %s28_s14 }
   0x3   :  { %s30_s16 = sshll.u32 %s1064_s15, 4  ;;  %s15_s19 = sshll.u32 %s1295_s0, 4  ;;  %s31_s16 = int_to_ptr.vmem [resolvable:$true] %s30_s16  ;;  %s16_s19 = int_to_ptr.hbm [resolvable:$true] %s15_s19 }
   0x4   :  { %s1065_s20 = smov 128   ;;  %s1066_s21 = smov 8  }
   0x5   :  { %36 = dma.hbm_to_vmem [thread:$0]  %s29_s14, 1024, %s31_s16, [#allocation9], %s1065_s20, %s1065_s20, %s1066_s21  }
   0x6   :  { %s1067_s22 = smov [#allocation5]   ;;  %s41_s1 = sshll.u32 %s1297_s2, 4  ;;  %s42_s1 = int_to_ptr.hbm [resolvable:$true] %s41_s1 }
   0x7   :  { %s17_s23 = sshll.u32 %s1067_s22, 4  ;;  %s1068_s0 = smov [#allocation10]   ;;  %s18_s23 = int_to_ptr.vmem [resolvable:$true] %s17_s23 }
   0x8   :  { %23 = dma.hbm_to_vmem [thread:$0]  %s16_s19, 1024, %s18_s23, [#allocation6], %s1065_s20, %s1065_s20, %s1066_s21  }
   0x9   :  { %s43_s26 = sshll.u32 %s1068_s0, 4  ;;  %s44_s26 = int_to_ptr.vmem [resolvable:$true] %s43_s26 }
   0xa   :  { %49 = dma.hbm_to_vmem [thread:$0]  %s42_s1, 1024, %s44_s26, [#allocation9], %s1065_s20, %s1065_s20, %s1066_s21  }
   0xb   :  { %1058 = dma.done.wait [#allocation6], 1024  }
   0xc   :  { %1059 = vsyncadd [#allocation6], 4294966272 }
   0xd   :  { %1060 = dma.done.wait [#allocation9], 2048  }
   0xe   :  { %1061 = vsyncadd [#allocation9], 4294965248  ;;  %vm83_vm0 = vcmask 261120   ;;  %v100_v0 = vld [vmem:[#allocation8] sm:$0xff]  ;;  %v102_v1 = vld [vmem:[#allocation8 + $0x10] sm:$0xff]  ;;  %vm66_vm1 = vcmask 7168  }
   0xf   :  { %v92_v2 = vld [vmem:[#allocation5] sm:$0xff]  ;;  %878 = vmatpush.xpose.msk.msra.mxu0 %vm83_vm0, %v100_v0  ;;  %882 = vmatpush.xpose.msk.msra.mxu2 %vm83_vm0, %v102_v1  ;;  %v94_v3 = vld [vmem:[#allocation5 + $0x10] sm:$0xff]  ;;  %v103_v5 = vld [vmem:[#allocation8 + $0x18] sm:$0xff]  ;;  %v1069_v16 = vmov -inf   ;;  %vm325_vm2 = vcmask 64512   ;;  %v1070_v33 = vmov 0  }
  0x10   :  { %v106_v4 = vld [vmem:[#allocation8 + $0x30] sm:$0xff]  ;;  %884 = vmatpush.xpose.msk.msra.mxu3 %vm83_vm0, %v103_v5  ;;  %v95_v6 = vld [vmem:[#allocation5 + $0x18] sm:$0xff]  ;;  %v101_v8 = vld [vmem:[#allocation8 + $0x8] sm:$0xff]  ;;  %67 = vst.msk [vmem:[#allocation2] sm:$0xff] %vm66_vm1, %v1069_v16  ;;  %913 = vset.pattern.permute.xlu1 %v1070_v33  ;;  %v1071_v34 = vmov 0.0   ;;  %s1072_s2 = smov [#allocation11]  }
  0x11   :  { %v107_v7 = vld [vmem:[#allocation8 + $0x38] sm:$0xff]  ;;  %v105_v9 = vld [vmem:[#allocation8 + $0x28] sm:$0xff]  ;;  %v104_v10 = vld [vmem:[#allocation8 + $0x20] sm:$0xff]  ;;  %880 = vmatpush.xpose.msk.msra.mxu1 %vm83_vm0, %v101_v8  ;;  %68 = vst.msk [vmem:[#allocation2 + $0x8] sm:$0xff] %vm66_vm1, %v1069_v16  ;;  %911 = vset.pattern.permute.xlu2 %v1070_v33  ;;  %s862_s27 = sshll.u32 %s1072_s2, 4  ;;  %s864_s30 = sshll.u32 %s1298_s3, 4  ;;  %s863_s27 = int_to_ptr.vmem [resolvable:$true] %s862_s27  ;;  %s865_s30 = int_to_ptr.hbm [resolvable:$true] %s864_s30 }
  0x12   :  { %879 = vmatmul.msk.f32.vlgmr.msra.gmra.mxu0 %vm83_vm0, %v92_v2  ;;  %883 = vmatmul.msk.f32.vlgmr.msra.gmra.mxu2 %vm83_vm0, %v94_v3  ;;  %v93_v11 = vld [vmem:[#allocation5 + $0x8] sm:$0xff]  ;;  %v98_v12 = vld [vmem:[#allocation5 + $0x30] sm:$0xff]  ;;  %v96_v13 = vld [vmem:[#allocation5 + $0x20] sm:$0xff]  ;;  %69 = vst.msk [vmem:[#allocation2 + $0x10] sm:$0xff] %vm66_vm1, %v1069_v16 }
  0x13   :  { %890 = vmatpush.xpose.msk.msrb.mxu2 %vm83_vm0, %v106_v4  ;;  %885 = vmatmul.msk.f32.vlgmr.msra.gmra.mxu3 %vm83_vm0, %v95_v6  ;;  %v99_v14 = vld [vmem:[#allocation5 + $0x38] sm:$0xff]  ;;  %v97_v15 = vld [vmem:[#allocation5 + $0x28] sm:$0xff]  ;;  %70 = vst.msk [vmem:[#allocation2 + $0x18] sm:$0xff] %vm66_vm1, %v1069_v16 }
  0x14   :  { %892 = vmatpush.xpose.msk.msrb.mxu3 %vm83_vm0, %v107_v7  ;;  %886 = vmatpush.xpose.msk.msrb.mxu0 %vm83_vm0, %v104_v10  ;;  %71 = vst.msk [vmem:[#allocation2 + $0x20] sm:$0xff] %vm66_vm1, %v1069_v16 }
  0x15   :  { %888 = vmatpush.xpose.msk.msrb.mxu1 %vm83_vm0, %v105_v9  ;;  %72 = vst.msk [vmem:[#allocation2 + $0x28] sm:$0xff] %vm66_vm1, %v1069_v16  ;;  %912 = vset.pattern.permute.xlu0 %v1070_v33 }
  0x16   :  { %881 = vmatmul.msk.f32.vlgmr.msra.gmra.mxu1 %vm83_vm0, %v93_v11  ;;  %73 = vst.msk [vmem:[#allocation2 + $0x30] sm:$0xff] %vm66_vm1, %v1069_v16 }
  0x17   :  { %74 = vst.msk [vmem:[#allocation2 + $0x38] sm:$0xff] %vm66_vm1, %v1069_v16  ;;  %v317_v35 = vld [vmem:[#allocation2] sm:$0xff] }
  0x18   :  { %85 = vst.msk [vmem:[#allocation4 + $0x8] sm:$0xff] %vm83_vm0, %v1071_v34  ;;  %v318_v40 = vld [vmem:[#allocation2 + $0x8] sm:$0xff] }
  0x19   :  { %75 = vst.msk [vmem:[#allocation3] sm:$0xff] %vm66_vm1, %v1071_v34  ;;  %v319_v38 = vld [vmem:[#allocation2 + $0x10] sm:$0xff] }
  0x1a   :  { %891 = vmatmul.msk.f32.vlgmr.msrb.gmra.mxu2 %vm83_vm0, %v98_v12  ;;  %887 = vmatmul.msk.f32.vlgmr.msrb.gmra.mxu0 %vm83_vm0, %v96_v13  ;;  %76 = vst.msk [vmem:[#allocation3 + $0x8] sm:$0xff] %vm66_vm1, %v1071_v34  ;;  %v320_v45 = vld [vmem:[#allocation2 + $0x18] sm:$0xff] }
  0x1b   :  { %893 = vmatmul.msk.f32.vlgmr.msrb.gmra.mxu3 %vm83_vm0, %v99_v14  ;;  %77 = vst.msk [vmem:[#allocation3 + $0x10] sm:$0xff] %vm66_vm1, %v1071_v34  ;;  %v321_v56 = vld [vmem:[#allocation2 + $0x20] sm:$0xff] }
  0x1c   :  { %78 = vst.msk [vmem:[#allocation3 + $0x18] sm:$0xff] %vm66_vm1, %v1071_v34  ;;  %v322_v50 = vld [vmem:[#allocation2 + $0x28] sm:$0xff] }
  0x1d   :  { %79 = vst.msk [vmem:[#allocation3 + $0x20] sm:$0xff] %vm66_vm1, %v1071_v34  ;;  %v323_v46 = vld [vmem:[#allocation2 + $0x30] sm:$0xff] }
  0x1e   :  { %889 = vmatmul.msk.f32.vlgmr.msrb.gmra.mxu1 %vm83_vm0, %v97_v15  ;;  %80 = vst.msk [vmem:[#allocation3 + $0x28] sm:$0xff] %vm66_vm1, %v1071_v34  ;;  %v1189_v55 = vld [vmem:[#allocation2 + $0x38] sm:$0xff] }
  0x1f   :  { %81 = vst.msk [vmem:[#allocation3 + $0x30] sm:$0xff] %vm66_vm1, %v1071_v34 }
  0x20   :  { %82 = vst.msk [vmem:[#allocation3 + $0x38] sm:$0xff] %vm66_vm1, %v1071_v34 }
  0x21   :  { %84 = vst.msk [vmem:[#allocation4] sm:$0xff] %vm83_vm0, %v1071_v34 }
  0x22   :  { %86 = vst.msk [vmem:[#allocation4 + $0x10] sm:$0xff] %vm83_vm0, %v1071_v34 }
  0x23   :  { %87 = vst.msk [vmem:[#allocation4 + $0x18] sm:$0xff] %vm83_vm0, %v1071_v34 }
  0x24   :  { %88 = vst.msk [vmem:[#allocation4 + $0x20] sm:$0xff] %vm83_vm0, %v1071_v34 }
  0x25   :  { %89 = vst.msk [vmem:[#allocation4 + $0x28] sm:$0xff] %vm83_vm0, %v1071_v34 }
  0x26   :  { %90 = vst.msk [vmem:[#allocation4 + $0x30] sm:$0xff] %vm83_vm0, %v1071_v34 }
  0x27   :  { %91 = vst.msk [vmem:[#allocation4 + $0x38] sm:$0xff] %vm83_vm0, %v1071_v34 }
  0x8f   :  { %v1134_v17 = vpop.f32.mrf.mxu0 }
  0x90   :  { %v326_v18 = vsel %vm325_vm2, %v1134_v17, -inf }
  0x91   :  { %327 = vmax.xlane.f32.xlu1 %v326_v18  ;;  %v561_v18 = vld [vmem:[#allocation10 + $0x10] sm:$0xff] }
  0x92   :  { %631 = vmatpush.msra.mxu2 %v561_v18  ;;  %v448_v18 = vld [vmem:[#allocation3 + $0x10] sm:$0xff] }
  0x93   :  { %v1139_v19 = vpop.f32.mrf.mxu1 }
  0x94   :  { %v329_v22 = vsel %vm325_vm2, %v1139_v19, -inf }
  0x95   :  { %v1141_v20 = vpop.f32.mrf.mxu2 }
  0x96   :  { %v332_v21 = vsel %vm325_vm2, %v1141_v20, -inf  ;;  %v1147_v23 = vpop.f32.mrf.mxu3 }
  0x97   :  { %333 = vmax.xlane.f32.xlu0 %v332_v21  ;;  %v335_v25 = vsel %vm325_vm2, %v1147_v23, -inf  ;;  %v1161_v30 = vpop.f32.mrf.mxu0  ;;  %v560_v21 = vld [vmem:[#allocation10 + $0x8] sm:$0xff] }
  0x98   :  { %v338_v32 = vsel %vm325_vm2, %v1161_v30, -inf  ;;  %608 = vmatpush.msra.mxu1 %v560_v21 }
  0x99   :  { %330 = vmax.xlane.f32.xlu1 %v329_v22  ;;  %v565_v22 = vld [vmem:[#allocation10 + $0x30] sm:$0xff] }
  0x9a   :  { %723 = vmatpush.msrb.mxu2 %v565_v22 }
  0x9b   :  { %v1149_v24 = vpop.f32.mrf.mxu1 }
  0x9c   :  { %v341_v28 = vsel %vm325_vm2, %v1149_v24, -inf }
  0x9d   :  { %v1153_v26 = vpop.f32.mrf.mxu2 }
  0x9e   :  { %v344_v27 = vsel %vm325_vm2, %v1153_v26, -inf  ;;  %v1159_v29 = vpop.f32.mrf.mxu3 }
  0x9f   :  { %336 = vmax.xlane.f32.xlu0 %v335_v25  ;;  %345 = vmax.xlane.f32.xlu2 %v344_v27  ;;  %v347_v31 = vsel %vm325_vm2, %v1159_v29, -inf  ;;  %v559_v25 = vld [vmem:[#allocation10] sm:$0xff] }
  0xa0   :  { %585 = vmatpush.msra.mxu0 %v559_v25 }
  0xa1   :  { %342 = vmax.xlane.f32.xlu1 %v341_v28 }
  0xa7   :  { %348 = vmax.xlane.f32.xlu2 %v347_v31  ;;  %339 = vmax.xlane.f32.xlu0 %v338_v32  ;;  %v563_v32 = vld [vmem:[#allocation10 + $0x20] sm:$0xff] }
  0xa8   :  { %677 = vmatpush.msrb.mxu0 %v563_v32 }
 0x104   :  { %v328_v36 = vpop.xlane.xlu1 %327 }
 0x105   :  { %v350_v37 = vmax.f32 %v317_v35, %v328_v36 }
 0x107   :  { %767 = vst.msk [vmem:[#allocation2] sm:$0xff] %vm66_vm1, %v350_v37  ;;  %384 = vperm.xlu1 %913, %v350_v37   ;;  %v358_v1 = vsub.f32 %v317_v35, %v350_v37  ;;  %v562_v37 = vld [vmem:[#allocation10 + $0x18] sm:$0xff] }
 0x108   :  { %654 = vmatpush.msra.mxu3 %v562_v37 }
 0x109   :  { %v366_v4 = vmul.f32 1.442695, %v358_v1 }
 0x10a   :  { %v334_v39 = vpop.xlane.xlu0 %333 }
 0x10b   :  { %v352_v41 = vmax.f32 %v319_v38, %v334_v39 }
 0x10c   :  { %v331_v42 = vpop.xlane.xlu1 %330 }
 0x10d   :  { %769 = vst.msk [vmem:[#allocation2 + $0x10] sm:$0xff] %vm66_vm1, %v352_v41  ;;  %394 = vperm.xlu2 %911, %v352_v41   ;;  %v351_v43 = vmax.f32 %v318_v40, %v331_v42  ;;  %v360_v44 = vsub.f32 %v319_v38, %v352_v41 }
 0x10f   :  { %768 = vst.msk [vmem:[#allocation2 + $0x8] sm:$0xff] %vm66_vm1, %v351_v43  ;;  %v370_v47 = vmul.f32 1.442695, %v360_v44  ;;  %v359_v0 = vsub.f32 %v318_v40, %v351_v43  ;;  %v566_v44 = vld [vmem:[#allocation10 + $0x38] sm:$0xff] }
 0x110   :  { %746 = vmatpush.msrb.mxu3 %v566_v44 }
 0x111   :  { %914 = vpow2.f32 %v370_v47  ;;  %v368_v3 = vmul.f32 1.442695, %v359_v0 }
 0x112   :  { %v337_v48 = vpop.xlane.xlu0 %336  ;;  %v346_v49 = vpop.xlane.xlu2 %345 }
 0x113   :  { %v353_v51 = vmax.f32 %v320_v45, %v337_v48  ;;  %v356_v52 = vmax.f32 %v323_v46, %v346_v49  ;;  %v564_v48 = vld [vmem:[#allocation10 + $0x28] sm:$0xff] }
 0x114   :  { %v343_v53 = vpop.xlane.xlu1 %342  ;;  %700 = vmatpush.msrb.mxu1 %v564_v48 }
 0x115   :  { %770 = vst.msk [vmem:[#allocation2 + $0x18] sm:$0xff] %vm66_vm1, %v353_v51  ;;  %399 = vperm.xlu0 %912, %v353_v51   ;;  %389 = vperm.xlu2 %911, %v351_v43   ;;  %v355_v54 = vmax.f32 %v322_v50, %v343_v53  ;;  %v361_v6 = vsub.f32 %v320_v45, %v353_v51 }
 0x116   :  { %773 = vst.msk [vmem:[#allocation2 + $0x30] sm:$0xff] %vm66_vm1, %v356_v52  ;;  %v364_v12 = vsub.f32 %v323_v46, %v356_v52 }
 0x117   :  { %772 = vst.msk [vmem:[#allocation2 + $0x28] sm:$0xff] %vm66_vm1, %v355_v54  ;;  %v1194_v61 = vpop.eup %914  ;;  %v363_v5 = vsub.f32 %v322_v50, %v355_v54  ;;  %v372_v9 = vmul.f32 1.442695, %v361_v6 }
 0x118   :  { %v378_v13 = vmul.f32 1.442695, %v364_v12  ;;  %v456_v21 = vmul.f32 %v1194_v61, %v448_v18  ;;  %v506_v18 = vld [vmem:[#allocation4 + $0x18] sm:$0xff] }
 0x119   :  { %v376_v8 = vmul.f32 1.442695, %v363_v5 }
 0x11a   :  { %v349_v57 = vpop.xlane.xlu2 %348  ;;  %v340_v58 = vpop.xlane.xlu0 %339 }
 0x11b   :  { %v1192_v59 = vmax.f32 %v1189_v55, %v349_v57  ;;  %v354_v60 = vmax.f32 %v321_v56, %v340_v58 }
 0x11d   :  { %v365_v62 = vsub.f32 %v1189_v55, %v1192_v59  ;;  %774 = vst.msk [vmem:[#allocation2 + $0x38] sm:$0xff] %vm66_vm1, %v1192_v59  ;;  %523 = vperm.xlu0 %912, %v1194_v61   ;;  %414 = vperm.xlu2 %911, %v356_v52   ;;  %v362_v63 = vsub.f32 %v321_v56, %v354_v60  ;;  %v447_v55 = vld [vmem:[#allocation3 + $0x8] sm:$0xff] }
 0x11e   :  { %419 = vperm.xlu1 %913, %v1192_v59   ;;  %771 = vst.msk [vmem:[#allocation2 + $0x20] sm:$0xff] %vm66_vm1, %v354_v60 }
 0x11f   :  { %v374_v2 = vmul.f32 1.442695, %v362_v63 }
 0x121   :  { %916 = vpow2.f32 %v374_v2 }
 0x122   :  { %918 = vpow2.f32 %v368_v3 }
 0x123   :  { %920 = vpow2.f32 %v366_v4 }
 0x124   :  { %922 = vpow2.f32 %v376_v8 }
 0x125   :  { %404 = vperm.xlu2 %911, %v354_v60   ;;  %924 = vpow2.f32 %v372_v9 }
 0x126   :  { %409 = vperm.xlu1 %913, %v355_v54   ;;  %926 = vpow2.f32 %v378_v13 }
 0x127   :  { %v1203_v7 = vpop.eup %916 }
 0x128   :  { %533 = vperm.xlu0 %912, %v1203_v7   ;;  %v1206_v10 = vpop.eup %918 }
 0x129   :  { %v1208_v11 = vpop.eup %920  ;;  %v455_v59 = vmul.f32 %v1206_v10, %v447_v55 }
 0x12a   :  { %v1212_v14 = vpop.eup %922 }
 0x12b   :  { %v1214_v15 = vpop.eup %924 }
 0x12c   :  { %v1218_v16 = vpop.eup %926 }
 0x12d   :  { %518 = vperm.xlu2 %911, %v1206_v10  }
 0x12e   :  { %513 = vperm.xlu1 %913, %v1208_v11  }
 0x135   :  { %538 = vperm.xlu2 %911, %v1212_v14  }
 0x136   :  { %528 = vperm.xlu1 %913, %v1214_v15  }
 0x13e   :  { %543 = vperm.xlu1 %913, %v1218_v16  }
 0x167   :  { %v395_v27 = vpop.permute.xlu2 %394 }
 0x168   :  { %v424_v28 = vsub.f32 %v1141_v20, %v395_v27 }
 0x16a   :  { %v434_v31 = vmul.f32 1.442695, %v424_v28 }
 0x16c   :  { %928 = vpow2.f32 %v434_v31 }
 0x16f   :  { %v390_v33 = vpop.permute.xlu2 %389 }
 0x170   :  { %v423_v34 = vsub.f32 %v1139_v19, %v390_v33 }
 0x172   :  { %v929_v35 = vpop.eup %928  ;;  %v432_v36 = vmul.f32 1.442695, %v423_v34  ;;  %v505_v34 = vld [vmem:[#allocation4 + $0x10] sm:$0xff] }
 0x173   :  { %896 = vmatmul.msk.f32.vlgmr.msra.gmra.mxu2 %vm325_vm2, %v929_v35  ;;  %v468_v38 = vsel %vm325_vm2, %v929_v35, 0.0  ;;  %v504_v35 = vld [vmem:[#allocation4 + $0x8] sm:$0xff] }
 0x174   :  { %930 = vpow2.f32 %v432_v36  ;;  %469 = vadd.xlane.f32.xlu1 %v468_v38  ;;  %v446_v36 = vld [vmem:[#allocation3] sm:$0xff] }
 0x177   :  { %v415_v39 = vpop.permute.xlu2 %414 }
 0x178   :  { %v428_v20 = vsub.f32 %v1153_v26, %v415_v39 }
 0x179   :  { %v385_v40 = vpop.permute.xlu1 %384 }
 0x17a   :  { %v931_v41 = vpop.eup %930  ;;  %v442_v42 = vmul.f32 1.442695, %v428_v20  ;;  %v422_v43 = vsub.f32 %v1134_v17, %v385_v40 }
 0x17b   :  { %895 = vmatmul.msk.f32.vlgmr.msra.gmra.mxu1 %vm325_vm2, %v931_v41  ;;  %v465_v19 = vsel %vm325_vm2, %v931_v41, 0.0  ;;  %v454_v41 = vmul.f32 %v1208_v11, %v446_v36  ;;  %v509_v11 = vld [vmem:[#allocation4 + $0x30] sm:$0xff] }
 0x17c   :  { %932 = vpow2.f32 %v442_v42  ;;  %v430_v45 = vmul.f32 1.442695, %v422_v43  ;;  %466 = vadd.xlane.f32.xlu2 %v465_v19  ;;  %v450_v19 = vld [vmem:[#allocation3 + $0x20] sm:$0xff] }
 0x17e   :  { %934 = vpow2.f32 %v430_v45  ;;  %v503_v45 = vld [vmem:[#allocation4] sm:$0xff] }
 0x17f   :  { %v405_v46 = vpop.permute.xlu2 %404 }
 0x180   :  { %v426_v47 = vsub.f32 %v1161_v30, %v405_v46 }
 0x182   :  { %v933_v26 = vpop.eup %932  ;;  %v438_v49 = vmul.f32 1.442695, %v426_v47  ;;  %v458_v47 = vmul.f32 %v1203_v7, %v450_v19 }
 0x183   :  { %900 = vmatmul.msk.f32.vlgmr.msrb.gmra.mxu2 %vm325_vm2, %v933_v26  ;;  %v480_v3 = vsel %vm325_vm2, %v933_v26, 0.0 }
 0x184   :  { %v935_v17 = vpop.eup %934  ;;  %936 = vpow2.f32 %v438_v49 }
 0x185   :  { %894 = vmatmul.msk.f32.vlgmr.msra.gmra.mxu0 %vm325_vm2, %v935_v17  ;;  %v462_v50 = vsel %vm325_vm2, %v935_v17, 0.0 }
 0x186   :  { %463 = vadd.xlane.f32.xlu0 %v462_v50 }
 0x187   :  { %v400_v51 = vpop.permute.xlu0 %399  ;;  %v519_v12 = vpop.permute.xlu2 %518 }
 0x188   :  { %v425_v52 = vsub.f32 %v1147_v23, %v400_v51  ;;  %v552_v38 = vmul.f32 %v519_v12, %v504_v35  ;;  %v449_v51 = vld [vmem:[#allocation3 + $0x18] sm:$0xff] }
 0x18a   :  { %v937_v53 = vpop.eup %936  ;;  %v436_v54 = vmul.f32 1.442695, %v425_v52 }
 0x18b   :  { %v474_v30 = vsel %vm325_vm2, %v937_v53, 0.0 }
 0x18c   :  { %938 = vpow2.f32 %v436_v54  ;;  %v507_v54 = vld [vmem:[#allocation4 + $0x20] sm:$0xff] }
 0x18d   :  { %898 = vmatmul.msk.f32.vlgmr.msrb.gmra.mxu0 %vm325_vm2, %v937_v53 }
 0x18e   :  { %475 = vadd.xlane.f32.xlu0 %v474_v30 }
 0x18f   :  { %v1254_v22 = vpop.permute.xlu2 %538  ;;  %v524_v28 = vpop.permute.xlu0 %523 }
 0x190   :  { %v420_v56 = vpop.permute.xlu1 %419  ;;  %v553_v61 = vmul.f32 %v524_v28, %v505_v34 }
 0x191   :  { %v429_v57 = vsub.f32 %v1159_v29, %v420_v56  ;;  %v457_v56 = vmul.f32 %v1214_v15, %v449_v51 }
 0x192   :  { %v939_v58 = vpop.eup %938 }
 0x193   :  { %v444_v60 = vmul.f32 1.442695, %v429_v57  ;;  %897 = vmatmul.msk.f32.vlgmr.msra.gmra.mxu3 %vm325_vm2, %v939_v58  ;;  %v471_v63 = vsel %vm325_vm2, %v939_v58, 0.0 }
 0x194   :  { %472 = vadd.xlane.f32.xlu2 %v471_v63 }
 0x195   :  { %940 = vpow2.f32 %v444_v60 }
 0x198   :  { %v410_v23 = vpop.permute.xlu1 %409 }
 0x199   :  { %v427_v0 = vsub.f32 %v1149_v24, %v410_v23  ;;  %v380_v24 = vmul.f32 1.442695, %v365_v62 }
 0x19a   :  { %v534_v32 = vpop.permute.xlu0 %533 }
 0x19b   :  { %v941_v1 = vpop.eup %940  ;;  %v440_v2 = vmul.f32 1.442695, %v427_v0  ;;  %v555_v60 = vmul.f32 %v534_v32, %v507_v54  ;;  %v508_v32 = vld [vmem:[#allocation4 + $0x28] sm:$0xff] }
 0x19c   :  { %901 = vmatmul.msk.f32.vlgmr.msrb.gmra.mxu3 %vm325_vm2, %v941_v1  ;;  %481 = vadd.xlane.f32.xlu2 %v480_v3  ;;  %v483_v29 = vsel %vm325_vm2, %v941_v1, 0.0  ;;  %v452_v1 = vld [vmem:[#allocation3 + $0x30] sm:$0xff]  ;;  %v453_v3 = vld [vmem:[#allocation3 + $0x38] sm:$0xff] }
 0x19d   :  { %942 = vpow2.f32 %v440_v2  ;;  %484 = vadd.xlane.f32.xlu0 %v483_v29  ;;  %v460_v15 = vmul.f32 %v1218_v16, %v452_v1 }
 0x19e   :  { %944 = vpow2.f32 %v380_v24 }
 0x1a0   :  { %v514_v8 = vpop.permute.xlu1 %513 }
 0x1a1   :  { %v551_v48 = vmul.f32 %v514_v8, %v503_v45 }
 0x1a3   :  { %v943_v4 = vpop.eup %942 }
 0x1a4   :  { %899 = vmatmul.msk.f32.vlgmr.msrb.gmra.mxu1 %vm325_vm2, %v943_v4  ;;  %v477_v5 = vsel %vm325_vm2, %v943_v4, 0.0  ;;  %v1248_v6 = vpop.eup %944 }
 0x1a5   :  { %478 = vadd.xlane.f32.xlu1 %v477_v5  ;;  %v461_v4 = vmul.f32 %v1248_v6, %v453_v3 }
 0x1a8   :  { %v1251_v9 = vpop.permute.xlu1 %528 }
 0x1b0   :  { %v544_v13 = vpop.permute.xlu1 %543 }
 0x1b1   :  { %548 = vperm.xlu0 %912, %v1248_v6   ;;  %v557_v53 = vmul.f32 %v544_v13, %v509_v11 }
 0x1e7   :  { %v470_v25 = vpop.xlane.xlu1 %469 }
 0x1e8   :  { %v488_v27 = vadd.f32 %v470_v25, %v456_v21  ;;  %v451_v21 = vld [vmem:[#allocation3 + $0x28] sm:$0xff]  ;;  %v554_v25 = vmul.f32 %v1251_v9, %v506_v18  ;;  %v556_v9 = vmul.f32 %v1254_v22, %v508_v32 }
 0x1e9   :  { %v459_v28 = vmul.f32 %v1212_v14, %v451_v21  ;;  %v510_v14 = vld [vmem:[#allocation4 + $0x38] sm:$0xff] }
 0x1ea   :  { %497 = vst.msk [vmem:[#allocation3 + $0x10] sm:$0xff] %vm66_vm1, %v488_v27 }
 0x1ef   :  { %v467_v62 = vpop.xlane.xlu2 %466 }
 0x1f0   :  { %v487_v31 = vadd.f32 %v467_v62, %v455_v59 }
 0x1f1   :  { %v780_v33 = vld [vmem:[#allocation3 + $0x10] sm:$0xff] }
 0x1f2   :  { %496 = vst.msk [vmem:[#allocation3 + $0x8] sm:$0xff] %vm66_vm1, %v487_v31  ;;  %946 = vrcp.f32 %v780_v33 }
 0x1f6   :  { %v633_v37 = vpop.f32.mrf.mxu2 }
 0x1f7   :  { %v753_v39 = vadd.f32 %v633_v37, %v553_v61 }
 0x1f8   :  { %v947_v20 = vpop.eup %946  ;;  %v610_v40 = vpop.f32.mrf.mxu1 }
 0x1f9   :  { %761 = vst.msk [vmem:[#allocation4 + $0x10] sm:$0xff] %vm83_vm0, %v753_v39  ;;  %v752_v10 = vadd.f32 %v610_v40, %v552_v38  ;;  %v464_v42 = vpop.xlane.xlu0 %463  ;;  %814 = vperm.xlu0 %912, %v947_v20   ;;  %v779_v43 = vld [vmem:[#allocation3 + $0x8] sm:$0xff] }
 0x1fa   :  { %v486_v44 = vadd.f32 %v464_v42, %v454_v41  ;;  %948 = vrcp.f32 %v779_v43 }
 0x1fb   :  { %760 = vst.msk [vmem:[#allocation4 + $0x8] sm:$0xff] %vm83_vm0, %v752_v10 }
 0x1fc   :  { %495 = vst.msk [vmem:[#allocation3] sm:$0xff] %vm66_vm1, %v486_v44 }
 0x200   :  { %v949_v46 = vpop.eup %948  ;;  %v796_v42 = vld [vmem:[#allocation4 + $0x10] sm:$0xff] }
 0x201   :  { %v476_v26 = vpop.xlane.xlu0 %475  ;;  %809 = vperm.xlu1 %913, %v949_v46  }
 0x202   :  { %v490_v49 = vadd.f32 %v476_v26, %v458_v47  ;;  %v587_v17 = vpop.f32.mrf.mxu0  ;;  %v795_v19 = vld [vmem:[#allocation4 + $0x8] sm:$0xff] }
 0x203   :  { %v751_v50 = vadd.f32 %v587_v17, %v551_v48  ;;  %v778_v52 = vld [vmem:[#allocation3] sm:$0xff] }
 0x204   :  { %499 = vst.msk [vmem:[#allocation3 + $0x20] sm:$0xff] %vm66_vm1, %v490_v49  ;;  %950 = vrcp.f32 %v778_v52 }
 0x205   :  { %759 = vst.msk [vmem:[#allocation4] sm:$0xff] %vm83_vm0, %v751_v50 }
 0x206   :  { %v725_v30 = vpop.f32.mrf.mxu2 }
 0x207   :  { %v757_v7 = vadd.f32 %v725_v30, %v557_v53  ;;  %v473_v57 = vpop.xlane.xlu2 %472 }
 0x208   :  { %v489_v58 = vadd.f32 %v473_v57, %v457_v56 }
 0x209   :  { %765 = vst.msk [vmem:[#allocation4 + $0x30] sm:$0xff] %vm83_vm0, %v757_v7 }
 0x20a   :  { %v951_v63 = vpop.eup %950  ;;  %498 = vst.msk [vmem:[#allocation3 + $0x18] sm:$0xff] %vm66_vm1, %v489_v58  ;;  %v679_v23 = vpop.f32.mrf.mxu0 }
 0x20b   :  { %v755_v0 = vadd.f32 %v679_v23, %v555_v60  ;;  %804 = vperm.xlu2 %911, %v951_v63   ;;  %v782_v2 = vld [vmem:[#allocation3 + $0x20] sm:$0xff] }
 0x20c   :  { %952 = vrcp.f32 %v782_v2  ;;  %v794_v41 = vld [vmem:[#allocation4] sm:$0xff] }
 0x20d   :  { %763 = vst.msk [vmem:[#allocation4 + $0x20] sm:$0xff] %vm83_vm0, %v755_v0 }
 0x20f   :  { %v482_v29 = vpop.xlane.xlu2 %481 }
 0x210   :  { %v492_v5 = vadd.f32 %v482_v29, %v460_v15  ;;  %v485_v24 = vpop.xlane.xlu0 %484  ;;  %v800_v11 = vld [vmem:[#allocation4 + $0x30] sm:$0xff] }
 0x211   :  { %v493_v8 = vadd.f32 %v485_v24, %v461_v4  ;;  %v781_v12 = vld [vmem:[#allocation3 + $0x18] sm:$0xff] }
 0x212   :  { %v953_v13 = vpop.eup %952  ;;  %501 = vst.msk [vmem:[#allocation3 + $0x30] sm:$0xff] %vm66_vm1, %v492_v5  ;;  %954 = vrcp.f32 %v781_v12 }
 0x213   :  { %502 = vst.msk [vmem:[#allocation3 + $0x38] sm:$0xff] %vm66_vm1, %v493_v8  ;;  %824 = vperm.xlu1 %913, %v953_v13  }
 0x214   :  { %v798_v50 = vld [vmem:[#allocation4 + $0x20] sm:$0xff] }
 0x216   :  { %v656_v27 = vpop.f32.mrf.mxu3 }
 0x217   :  { %v754_v16 = vadd.f32 %v656_v27, %v554_v25 }
 0x218   :  { %v955_v6 = vpop.eup %954  ;;  %v479_v55 = vpop.xlane.xlu1 %478 }
 0x219   :  { %762 = vst.msk [vmem:[#allocation4 + $0x18] sm:$0xff] %vm83_vm0, %v754_v16  ;;  %v491_v59 = vadd.f32 %v479_v55, %v459_v28  ;;  %819 = vperm.xlu2 %911, %v955_v6   ;;  %v784_v62 = vld [vmem:[#allocation3 + $0x30] sm:$0xff] }
 0x21a   :  { %v785_v31 = vld [vmem:[#allocation3 + $0x38] sm:$0xff]  ;;  %956 = vrcp.f32 %v784_v62 }
 0x21b   :  { %500 = vst.msk [vmem:[#allocation3 + $0x28] sm:$0xff] %vm66_vm1, %v491_v59  ;;  %958 = vrcp.f32 %v785_v31 }
 0x21f   :  { %v748_v39 = vpop.f32.mrf.mxu3 }
 0x220   :  { %v957_v33 = vpop.eup %956  ;;  %v797_v46 = vld [vmem:[#allocation4 + $0x18] sm:$0xff] }
 0x221   :  { %v959_v34 = vpop.eup %958  ;;  %v702_v35 = vpop.f32.mrf.mxu1  ;;  %834 = vperm.xlu2 %911, %v957_v33  }
 0x222   :  { %v756_v61 = vadd.f32 %v702_v35, %v556_v9  ;;  %839 = vperm.xlu1 %913, %v959_v34   ;;  %v783_v36 = vld [vmem:[#allocation3 + $0x28] sm:$0xff] }
 0x223   :  { %v549_v37 = vpop.permute.xlu0 %548  ;;  %960 = vrcp.f32 %v783_v36 }
 0x224   :  { %764 = vst.msk [vmem:[#allocation4 + $0x28] sm:$0xff] %vm83_vm0, %v756_v61  ;;  %v558_v38 = vmul.f32 %v549_v37, %v510_v14 }
 0x226   :  { %v758_v20 = vadd.f32 %v748_v39, %v558_v38 }
 0x228   :  { %766 = vst.msk [vmem:[#allocation4 + $0x38] sm:$0xff] %vm83_vm0, %v758_v20 }
 0x229   :  { %v961_v40 = vpop.eup %960 }
 0x22a   :  { %829 = vperm.xlu0 %912, %v961_v40  }
 0x22b   :  { %v799_v56 = vld [vmem:[#allocation4 + $0x28] sm:$0xff] }
 0x22f   :  { %v801_v53 = vld [vmem:[#allocation4 + $0x38] sm:$0xff] }
 0x265   :  { %v805_v22 = vpop.permute.xlu2 %804 }
 0x266   :  { %v842_v10 = vmul.f32 %v805_v22, %v794_v41 }
 0x268   :  { %850 = vst.msk [vmem:[#allocation11] sm:$0xff] %vm83_vm0, %v842_v10 }
 0x26b   :  { %v815_v43 = vpop.permute.xlu0 %814 }
 0x26c   :  { %v844_v44 = vmul.f32 %v815_v43, %v796_v42 }
 0x26e   :  { %852 = vst.msk [vmem:[#allocation11 + $0x10] sm:$0xff] %vm83_vm0, %v844_v44 }
 0x273   :  { %v810_v45 = vpop.permute.xlu1 %809  ;;  %v820_v47 = vpop.permute.xlu2 %819 }
 0x274   :  { %v843_v48 = vmul.f32 %v810_v45, %v795_v19  ;;  %v845_v26 = vmul.f32 %v820_v47, %v797_v46 }
 0x276   :  { %851 = vst.msk [vmem:[#allocation11 + $0x8] sm:$0xff] %vm83_vm0, %v843_v48 }
 0x277   :  { %853 = vst.msk [vmem:[#allocation11 + $0x18] sm:$0xff] %vm83_vm0, %v845_v26 }
 0x27b   :  { %v835_v49 = vpop.permute.xlu2 %834 }
 0x27c   :  { %v848_v17 = vmul.f32 %v835_v49, %v800_v11 }
 0x27e   :  { %856 = vst.msk [vmem:[#allocation11 + $0x30] sm:$0xff] %vm83_vm0, %v848_v17 }
 0x285   :  { %v825_v51 = vpop.permute.xlu1 %824 }
 0x286   :  { %v846_v52 = vmul.f32 %v825_v51, %v798_v50 }
 0x288   :  { %854 = vst.msk [vmem:[#allocation11 + $0x20] sm:$0xff] %vm83_vm0, %v846_v52 }
 0x294   :  { %v840_v54 = vpop.permute.xlu1 %839 }
 0x295   :  { %v849_v30 = vmul.f32 %v840_v54, %v801_v53 }
 0x297   :  { %857 = vst.msk [vmem:[#allocation11 + $0x38] sm:$0xff] %vm83_vm0, %v849_v30 }
 0x29c   :  { %v830_v7 = vpop.permute.xlu0 %829 }
 0x29d   :  { %v847_v57 = vmul.f32 %v830_v7, %v799_v56 }
 0x29f   :  { %855 = vst.msk [vmem:[#allocation11 + $0x28] sm:$0xff] %vm83_vm0, %v847_v57 }
 0x2a0   :  { %870 = dma.vmem_to_hbm [thread:$0]  %s863_s27, 1024, %s865_s30, [#allocation7], %s1065_s20, %s1065_s20, %s1066_s21  }
 0x2a1   :  { %1062 = dma.done.wait [#allocation7], 1024  }
 0x2a2   :  { %1063 = vsyncadd [#allocation7], 4294966272 }
 0x2a3   :  { %875 = vsyncpa [#allocation6], 1 }
 0x2a4   :  { %876 = vsyncpa [#allocation9], 1 }
 0x2a5   :  { %877 = vsyncpa [#allocation7], 1 }

</bundles_post_ra>
